<compile_context>
chip_gen: v5e
topology: v5e:2x2
jax: 0.10.0
libtpu: 0.0.40
codegen_flags: <defaults>
</compile_context>

<pallas_src>
import functools

import jax
import jax.numpy as jnp
from jax.experimental import pallas as pl
from jax.experimental.pallas import tpu as pltpu

IN_CHANNELS = 48          # fixed by the classifier's Linear(96, 48) = 2 * 48
NUM_CLASSES = 5
BN_EPS = 1e-5
OUT_PAD = 128             # lane-dense padded width of the final output
C_CHUNK = 16              # channel chunk: bounds live accumulator vregs (< 64)
B_TILE_MAX = 8            # sublane-friendly batch tile


def _round_up(x, m):
    return -(-x // m) * m


def _default_hw_tile_max():
    """Chip-aware spatial tile cap: 8192 on 128-MiB-VMEM v5e/v6e, 4096 on v7x."""
    try:
        info = pltpu.get_tpu_info()
        vmem_bytes = int(getattr(info, "vmem_capacity_bytes", 64 * 1024 * 1024))
    except Exception:            # query unavailable -> cap that fits every generation
        vmem_bytes = 64 * 1024 * 1024
    return 8192 if vmem_bytes >= 96 * 1024 * 1024 else 4096


def _pool_kernel(x_ref, psum_ref, pmax_ref, sum_sc, max_sc, *,
                 hw_total, hw_tile, mask_tail):
    """Streaming global sum/max pooling over the flattened H*W (lane) axis.

    x_ref:             (b_tile, C, hw_tile) input tile (native dtype)
    psum_ref/pmax_ref: (1, b_tile, C) partial pooled outputs for this HW split
    sum_sc/max_sc:     (b_tile, C, 128) f32 lane-wide accumulators
    """
    p = pl.program_id(1)                 # HW split (parallel)
    s = pl.program_id(2)                 # HW tile within the split (arbitrary)
    n_split = pl.num_programs(1)
    n_s = pl.num_programs(2)

    C = x_ref.shape[1]
    lane_groups = hw_tile // 128         # hw_tile is always a multiple of 128

    @pl.when(s == 0)
    def _init():
        sum_sc[...] = jnp.zeros_like(sum_sc)
        max_sc[...] = jnp.full_like(max_sc, -jnp.inf)

    def _accumulate(masked):
        tile_base = (p * n_s + s) * hw_tile          # first H*W index of this tile
        for c0 in range(0, C, C_CHUNK):              # static channel chunks
            def body(g, carry):
                a_s, a_m = carry
                start = pl.multiple_of(g * 128, 128)
                blk = x_ref[:, pl.ds(c0, C_CHUNK), pl.ds(start, 128)].astype(jnp.float32)
                if masked:
                    lane = (jax.lax.broadcasted_iota(jnp.int32, blk.shape, 2)
                            + tile_base + start)
                    valid = lane < hw_total
                    a_s = a_s + jnp.where(valid, blk, 0.0)
                    a_m = jnp.maximum(a_m, jnp.where(valid, blk, -jnp.inf))
                else:
                    a_s = a_s + blk
                    a_m = jnp.maximum(a_m, blk)
                return a_s, a_m

            init = (sum_sc[:, pl.ds(c0, C_CHUNK), :],
                    max_sc[:, pl.ds(c0, C_CHUNK), :])
            a_s, a_m = jax.lax.fori_loop(0, lane_groups, body, init)
            sum_sc[:, pl.ds(c0, C_CHUNK), :] = a_s
            max_sc[:, pl.ds(c0, C_CHUNK), :] = a_m

    if mask_tail:
        # Only the last *global* HW tile contains ragged/padded lanes; every
        # other step takes the mask-free hot path (review item 1).
        is_tail = jnp.logical_and(p == n_split - 1, s == n_s - 1)

        @pl.when(jnp.logical_not(is_tail))
        def _hot():
            _accumulate(False)

        @pl.when(is_tail)
        def _tail():
            _accumulate(True)
    else:
        _accumulate(False)

    # One-time cross-lane (XLU) reduction per (batch block, split), deferred
    # out of the hot loop (review item 2).  The (b_tile, C) stores are small
    # and happen once per block, so the sub-128-lane store cost is negligible.
    @pl.when(s == n_s - 1)
    def _finalize():
        psum_ref[0] = jnp.sum(sum_sc[...], axis=-1)
        pmax_ref[0] = jnp.max(max_sc[...], axis=-1)


def _head_kernel(psum_ref, pmax_ref, w1a_ref, w1b_ref, b1_ref,
                 w2_ref, b2_ref, w3_ref, b3_ref, out_ref, *, hw_total):
    """Combine per-split partial pools and run the (BN-folded) classifier MLP."""
    gap = jnp.sum(psum_ref[...], axis=0) * (1.0 / hw_total)   # AdaptiveAvgPool2d((1,1))
    gmp = jnp.max(pmax_ref[...], axis=0)                      # AdaptiveMaxPool2d((1,1))
    # torch.cat([gap, gmp], dim=1) @ W1  ==  gap @ W1[:C] + gmp @ W1[C:]
    h = (jnp.dot(gap, w1a_ref[...], preferred_element_type=jnp.float32)
         + jnp.dot(gmp, w1b_ref[...], preferred_element_type=jnp.float32)
         + b1_ref[...])
    h = jnp.maximum(h, 0.0)                                   # ReLU
    # TODO(synk): Dropout(0.3) is the identity in eval mode; train-mode masking not implemented.
    h = jnp.dot(h, w2_ref[...], preferred_element_type=jnp.float32) + b2_ref[...]
    h = jnp.maximum(h, 0.0)                                   # ReLU
    out = jnp.dot(h, w3_ref[...], preferred_element_type=jnp.float32) + b3_ref[...]
    out_ref[...] = out.astype(out_ref.dtype)


def init_params(key, in_channels=IN_CHANNELS, num_classes=NUM_CLASSES):
    """Deterministic synthetic parameters (PyTorch-default-like init, non-trivial BN stats)."""
    ks = jax.random.split(key, 10)

    def linear(kw, kb, fan_in, fan_out):
        bound = 1.0 / jnp.sqrt(fan_in)
        w = jax.random.uniform(kw, (fan_in, fan_out), jnp.float32, -bound, bound)
        b = jax.random.uniform(kb, (1, fan_out), jnp.float32, -bound, bound)
        return w, b

    w1, b1 = linear(ks[0], ks[1], 2 * in_channels, 48)   # Linear(96, 48), stored (in, out)
    w2, b2 = linear(ks[2], ks[3], 48, 24)                # Linear(48, 24)
    w3, b3 = linear(ks[4], ks[5], 24, num_classes)       # Linear(24, num_classes)

    gamma = jax.random.uniform(ks[6], (1, 48), jnp.float32, 0.5, 1.5)
    beta = 0.1 * jax.random.normal(ks[7], (1, 48), jnp.float32)
    run_mean = 0.1 * jax.random.normal(ks[8], (1, 48), jnp.float32)
    run_var = jax.random.uniform(ks[9], (1, 48), jnp.float32, 0.5, 1.5)

    return dict(w1=w1, b1=b1, gamma=gamma, beta=beta, mean=run_mean, var=run_var,
                w2=w2, b2=b2, w3=w3, b3=b3)


def age_head_forward(x_nchw, params, num_classes=NUM_CLASSES, hw_tile_max=None):
    """x_nchw: (B, C, H, W), NCHW as in PyTorch (f32 or bf16)."""
    B, C, H, W = x_nchw.shape
    assert C == IN_CHANNELS, f"classifier expects {IN_CHANNELS} input channels"
    assert C % C_CHUNK == 0
    HW = H * W
    # No host-side astype: stream x in its native dtype, upcast per block in-kernel.
    x = x_nchw.reshape(B, C, HW)

    # ---- fold BatchNorm1d (eval mode, running stats) into the first Linear ----
    inv_std = jax.lax.rsqrt(params["var"].astype(jnp.float32) + BN_EPS)         # (1,48)
    scale = params["gamma"].astype(jnp.float32) * inv_std
    w1 = params["w1"].astype(jnp.float32) * scale                               # (96,48)
    b1 = ((params["b1"].astype(jnp.float32) - params["mean"].astype(jnp.float32)) * scale
          + params["beta"].astype(jnp.float32))
    w1a, w1b = w1[:C], w1[C:]              # cat order is [gap, gmp] — matches torch.cat

    # Zero-pad the classifier head so the final store is lane-dense (width 128).
    w3 = params["w3"].astype(jnp.float32)
    b3 = params["b3"].astype(jnp.float32)
    w3p = jnp.zeros((w3.shape[0], OUT_PAD), jnp.float32).at[:, :num_classes].set(w3)
    b3p = jnp.zeros((1, OUT_PAD), jnp.float32).at[:, :num_classes].set(b3)

    # ---- tiling ----
    if hw_tile_max is None:
        hw_tile_max = _default_hw_tile_max()
    # hw_tile is a multiple of 128; if it does not divide HW, the padded region
    # of the single boundary block is masked in-kernel (last global tile only).
    hw_tile = min(hw_tile_max, _round_up(HW, 128))
    total_tiles = -(-HW // hw_tile)
    b_tile = B if B <= B_TILE_MAX else B_TILE_MAX   # pooled-out sublane rule: b_tile==B or 8|b_tile
    n_b = -(-B // b_tile)

    # Review item 4: when the batch axis gives a single block, split the HW axis
    # into two parallel halves so both v7x TensorCores get work (harmless on
    # single-TC chips).  Only done when the tile count splits evenly.
    n_split = 2 if (n_b == 1 and total_tiles >= 2 and total_tiles % 2 == 0) else 1
    n_s = total_tiles // n_split
    mask_tail = (HW % hw_tile) != 0

    x_tile_bytes = b_tile * C * hw_tile * x.dtype.itemsize
    vmem_limit = int(min(112 * 1024 * 1024,
                         max(32 * 1024 * 1024, 2 * x_tile_bytes + 16 * 1024 * 1024)))

    pooled = jax.ShapeDtypeStruct((n_split, B, C), jnp.float32)
    psum, pmax = pl.pallas_call(
        functools.partial(_pool_kernel, hw_total=HW, hw_tile=hw_tile, mask_tail=mask_tail),
        out_shape=(pooled, pooled),
        grid=(n_b, n_split, n_s),
        in_specs=[pl.BlockSpec((b_tile, C, hw_tile),
                               lambda b, p, s: (b, 0, p * n_s + s))],
        out_specs=(pl.BlockSpec((1, b_tile, C), lambda b, p, s: (p, b, 0)),
                   pl.BlockSpec((1, b_tile, C), lambda b, p, s: (p, b, 0))),
        scratch_shapes=[pltpu.VMEM((b_tile, C, 128), jnp.float32),     # lane-wide sum acc
                        pltpu.VMEM((b_tile, C, 128), jnp.float32)],    # lane-wide max acc
        compiler_params=pltpu.CompilerParams(
            dimension_semantics=("parallel", "parallel", "arbitrary"),
            vmem_limit_bytes=vmem_limit),
    )(x)

    # Tiny head: single invocation, everything VMEM-resident by default.
    out_padded = pl.pallas_call(
        functools.partial(_head_kernel, hw_total=HW),
        out_shape=jax.ShapeDtypeStruct((B, OUT_PAD), jnp.float32),
    )(psum, pmax, w1a, w1b, b1,
      params["w2"].astype(jnp.float32), params["b2"].astype(jnp.float32),
      w3p, b3p)

    return out_padded[:, :num_classes]


def age_head_reference(x_nchw, params):
    """Pure-JAX reference mirroring the PyTorch forward (eval mode)."""
    B, C, H, W = x_nchw.shape
    x = x_nchw.reshape(B, C, H * W).astype(jnp.float32)
    feat = jnp.concatenate([jnp.mean(x, -1), jnp.max(x, -1)], axis=1)   # (B, 2C)
    h = feat @ params["w1"] + params["b1"]
    h = (h - params["mean"]) / jnp.sqrt(params["var"] + BN_EPS) * params["gamma"] + params["beta"]
    h = jnp.maximum(h, 0.0)
    h = jnp.maximum(h @ params["w2"] + params["b2"], 0.0)
    return h @ params["w3"] + params["b3"]


if __name__ == "__main__":
    key = jax.random.PRNGKey(0)
    k_x, k_x2, k_p = jax.random.split(key, 3)
    params = init_params(k_p)

    # Primary small test: single HW tile, no masking, no split.
    B, C, H, W = 2, IN_CHANNELS, 16, 16
    x = jax.random.normal(k_x, (B, C, H, W), jnp.float32)
    out = jax.block_until_ready(age_head_forward(x, params))
    ref = jax.block_until_ready(age_head_reference(x, params))
    assert out.shape == (B, NUM_CLASSES)
    assert jnp.allclose(out, ref, atol=1e-4, rtol=1e-4), "kernel mismatch vs reference (test 1)"

    # Second test: bf16 input, forced small tiles -> multi-tile streaming,
    # ragged last tile (masked path), and the 2-way parallel HW split.
    H2, W2 = 20, 20                       # HW = 400 = 3*128 + 16 -> 4 tiles of 128
    x2 = jax.random.normal(k_x2, (B, IN_CHANNELS, H2, W2), jnp.float32).astype(jnp.bfloat16)
    out2 = jax.block_until_ready(age_head_forward(x2, params, hw_tile_max=128))
    ref2 = jax.block_until_ready(age_head_reference(x2, params))
    assert jnp.allclose(out2, ref2, atol=2e-3, rtol=2e-3), "kernel mismatch vs reference (test 2)"

    print("KERNEL_OK")
</pallas_src>

<mosaic_0001>
module attributes {stable_mosaic.version = 11 : i64} {
  func.func @_pool_kernel(%arg0: i32, %arg1: i32, %arg2: i32, %arg3: memref<2x48x256xf32, #tpu.memory_space<vmem>>, %arg4: memref<1x2x48xf32, #tpu.memory_space<vmem>>, %arg5: memref<1x2x48xf32, #tpu.memory_space<vmem>>, %arg6: memref<2x48x128xf32, #tpu.memory_space<vmem>>, %arg7: memref<2x48x128xf32, #tpu.memory_space<vmem>>) attributes {dimension_semantics = [#tpu.dimension_semantics<parallel>, #tpu.dimension_semantics<parallel>, #tpu.dimension_semantics<arbitrary>], iteration_bounds = array<i64: 1, 1, 1>, scalar_prefetch = 0 : i64, scratch_operands = 2 : i64, tpu.core_type = #tpu.core_type<tc>, window_params = [{transform_indices = @transform_0, window_bounds = array<i64: 2, 48, 256>}, {transform_indices = @transform_1, window_bounds = array<i64: 1, 2, 48>}, {transform_indices = @transform_2, window_bounds = array<i64: 1, 2, 48>}]} {
    %c0_i32 = arith.constant 0 : i32
    %0 = arith.cmpi eq, %arg2, %c0_i32 : i32
    %1 = arith.extui %0 : i1 to i32
    %c0_i32_0 = arith.constant 0 : i32
    %2 = arith.cmpi ne, %1, %c0_i32_0 : i32
    scf.if %2 {
      %cst = arith.constant 0.000000e+00 : f32
      %24 = vector.broadcast %cst : f32 to vector<2x48x128xf32>
      %c0_46 = arith.constant 0 : index
      %c0_47 = arith.constant 0 : index
      %c0_48 = arith.constant 0 : index
      %25 = vector.load %arg6[%c0_46, %c0_47, %c0_48] : memref<2x48x128xf32, #tpu.memory_space<vmem>>, vector<2x48x128xf32>
      tpu.vector_store %arg6[%c0_46, %c0_47, %c0_48], %24 {strides = array<i32>} : memref<2x48x128xf32, #tpu.memory_space<vmem>>, vector<2x48x128xf32>,
      %cst_49 = arith.constant 0xFF800000 : f32
      %26 = vector.broadcast %cst_49 : f32 to vector<2x48x128xf32>
      %c0_50 = arith.constant 0 : index
      %c0_51 = arith.constant 0 : index
      %c0_52 = arith.constant 0 : index
      %27 = vector.load %arg7[%c0_50, %c0_51, %c0_52] : memref<2x48x128xf32, #tpu.memory_space<vmem>>, vector<2x48x128xf32>
      tpu.vector_store %arg7[%c0_50, %c0_51, %c0_52], %26 {strides = array<i32>} : memref<2x48x128xf32, #tpu.memory_space<vmem>>, vector<2x48x128xf32>,
    } else {
    }
    %c0 = arith.constant 0 : index
    %c0_1 = arith.constant 0 : index
    %c0_2 = arith.constant 0 : index
    %3 = vector.load %arg6[%c0, %c0_1, %c0_2] : memref<2x48x128xf32, #tpu.memory_space<vmem>>, vector<2x16x128xf32>
    %c0_3 = arith.constant 0 : index
    %c0_4 = arith.constant 0 : index
    %c0_5 = arith.constant 0 : index
    %4 = vector.load %arg7[%c0_3, %c0_4, %c0_5] : memref<2x48x128xf32, #tpu.memory_space<vmem>>, vector<2x16x128xf32>
    %c0_i32_6 = arith.constant 0 : i32
    %c2_i32 = arith.constant 2 : i32
    %5 = arith.addi %c0_i32_6, %c2_i32 : i32
    %c1_i32 = arith.constant 1 : i32
    %6:2 = scf.for %arg8 = %c0_i32_6 to %5 step %c1_i32 iter_args(%arg9 = %3, %arg10 = %4) -> (vector<2x16x128xf32>, vector<2x16x128xf32>)  : i32 {
      %c128_i32 = arith.constant 128 : i32
      %24 = arith.muli %arg8, %c128_i32 : i32
      %25 = tpu.assume_multiple %24, 128 : i32
      %c0_46 = arith.constant 0 : index
      %c0_47 = arith.constant 0 : index
      %26 = arith.index_cast %25 : i32 to index
      %27 = vector.load %arg3[%c0_46, %c0_47, %26] : memref<2x48x256xf32, #tpu.memory_space<vmem>>, vector<2x16x128xf32>
      %28 = arith.addf %arg9, %27 : vector<2x16x128xf32>
      %29 = arith.maximumf %arg10, %27 : vector<2x16x128xf32>
      scf.yield %28, %29 : vector<2x16x128xf32>, vector<2x16x128xf32>
    }
    %c2_i32_7 = arith.constant 2 : i32
    %c0_8 = arith.constant 0 : index
    %c0_9 = arith.constant 0 : index
    %c0_10 = arith.constant 0 : index
    %7 = vector.load %arg6[%c0_8, %c0_9, %c0_10] : memref<2x48x128xf32, #tpu.memory_space<vmem>>, vector<2x16x128xf32>
    tpu.vector_store %arg6[%c0_8, %c0_9, %c0_10], %6#0 {strides = array<i32>} : memref<2x48x128xf32, #tpu.memory_space<vmem>>, vector<2x16x128xf32>,
    %c0_11 = arith.constant 0 : index
    %c0_12 = arith.constant 0 : index
    %c0_13 = arith.constant 0 : index
    %8 = vector.load %arg7[%c0_11, %c0_12, %c0_13] : memref<2x48x128xf32, #tpu.memory_space<vmem>>, vector<2x16x128xf32>
    tpu.vector_store %arg7[%c0_11, %c0_12, %c0_13], %6#1 {strides = array<i32>} : memref<2x48x128xf32, #tpu.memory_space<vmem>>, vector<2x16x128xf32>,
    %c0_14 = arith.constant 0 : index
    %c16 = arith.constant 16 : index
    %c0_15 = arith.constant 0 : index
    %9 = vector.load %arg6[%c0_14, %c16, %c0_15] : memref<2x48x128xf32, #tpu.memory_space<vmem>>, vector<2x16x128xf32>
    %c0_16 = arith.constant 0 : index
    %c16_17 = arith.constant 16 : index
    %c0_18 = arith.constant 0 : index
    %10 = vector.load %arg7[%c0_16, %c16_17, %c0_18] : memref<2x48x128xf32, #tpu.memory_space<vmem>>, vector<2x16x128xf32>
    %c0_i32_19 = arith.constant 0 : i32
    %c2_i32_20 = arith.constant 2 : i32
    %11 = arith.addi %c0_i32_19, %c2_i32_20 : i32
    %c1_i32_21 = arith.constant 1 : i32
    %12:2 = scf.for %arg8 = %c0_i32_19 to %11 step %c1_i32_21 iter_args(%arg9 = %9, %arg10 = %10) -> (vector<2x16x128xf32>, vector<2x16x128xf32>)  : i32 {
      %c128_i32 = arith.constant 128 : i32
      %24 = arith.muli %arg8, %c128_i32 : i32
      %25 = tpu.assume_multiple %24, 128 : i32
      %c0_46 = arith.constant 0 : index
      %c16_47 = arith.constant 16 : index
      %26 = arith.index_cast %25 : i32 to index
      %27 = vector.load %arg3[%c0_46, %c16_47, %26] : memref<2x48x256xf32, #tpu.memory_space<vmem>>, vector<2x16x128xf32>
      %28 = arith.addf %arg9, %27 : vector<2x16x128xf32>
      %29 = arith.maximumf %arg10, %27 : vector<2x16x128xf32>
      scf.yield %28, %29 : vector<2x16x128xf32>, vector<2x16x128xf32>
    }
    %c2_i32_22 = arith.constant 2 : i32
    %c0_23 = arith.constant 0 : index
    %c16_24 = arith.constant 16 : index
    %c0_25 = arith.constant 0 : index
    %13 = vector.load %arg6[%c0_23, %c16_24, %c0_25] : memref<2x48x128xf32, #tpu.memory_space<vmem>>, vector<2x16x128xf32>
    tpu.vector_store %arg6[%c0_23, %c16_24, %c0_25], %12#0 {strides = array<i32>} : memref<2x48x128xf32, #tpu.memory_space<vmem>>, vector<2x16x128xf32>,
    %c0_26 = arith.constant 0 : index
    %c16_27 = arith.constant 16 : index
    %c0_28 = arith.constant 0 : index
    %14 = vector.load %arg7[%c0_26, %c16_27, %c0_28] : memref<2x48x128xf32, #tpu.memory_space<vmem>>, vector<2x16x128xf32>
    tpu.vector_store %arg7[%c0_26, %c16_27, %c0_28], %12#1 {strides = array<i32>} : memref<2x48x128xf32, #tpu.memory_space<vmem>>, vector<2x16x128xf32>,
    %c0_29 = arith.constant 0 : index
    %c32 = arith.constant 32 : index
    %c0_30 = arith.constant 0 : index
    %15 = vector.load %arg6[%c0_29, %c32, %c0_30] : memref<2x48x128xf32, #tpu.memory_space<vmem>>, vector<2x16x128xf32>
    %c0_31 = arith.constant 0 : index
    %c32_32 = arith.constant 32 : index
    %c0_33 = arith.constant 0 : index
    %16 = vector.load %arg7[%c0_31, %c32_32, %c0_33] : memref<2x48x128xf32, #tpu.memory_space<vmem>>, vector<2x16x128xf32>
    %c0_i32_34 = arith.constant 0 : i32
    %c2_i32_35 = arith.constant 2 : i32
    %17 = arith.addi %c0_i32_34, %c2_i32_35 : i32
    %c1_i32_36 = arith.constant 1 : i32
    %18:2 = scf.for %arg8 = %c0_i32_34 to %17 step %c1_i32_36 iter_args(%arg9 = %15, %arg10 = %16) -> (vector<2x16x128xf32>, vector<2x16x128xf32>)  : i32 {
      %c128_i32 = arith.constant 128 : i32
      %24 = arith.muli %arg8, %c128_i32 : i32
      %25 = tpu.assume_multiple %24, 128 : i32
      %c0_46 = arith.constant 0 : index
      %c32_47 = arith.constant 32 : index
      %26 = arith.index_cast %25 : i32 to index
      %27 = vector.load %arg3[%c0_46, %c32_47, %26] : memref<2x48x256xf32, #tpu.memory_space<vmem>>, vector<2x16x128xf32>
      %28 = arith.addf %arg9, %27 : vector<2x16x128xf32>
      %29 = arith.maximumf %arg10, %27 : vector<2x16x128xf32>
      scf.yield %28, %29 : vector<2x16x128xf32>, vector<2x16x128xf32>
    }
    %c2_i32_37 = arith.constant 2 : i32
    %c0_38 = arith.constant 0 : index
    %c32_39 = arith.constant 32 : index
    %c0_40 = arith.constant 0 : index
    %19 = vector.load %arg6[%c0_38, %c32_39, %c0_40] : memref<2x48x128xf32, #tpu.memory_space<vmem>>, vector<2x16x128xf32>
    tpu.vector_store %arg6[%c0_38, %c32_39, %c0_40], %18#0 {strides = array<i32>} : memref<2x48x128xf32, #tpu.memory_space<vmem>>, vector<2x16x128xf32>,
    %c0_41 = arith.constant 0 : index
    %c32_42 = arith.constant 32 : index
    %c0_43 = arith.constant 0 : index
    %20 = vector.load %arg7[%c0_41, %c32_42, %c0_43] : memref<2x48x128xf32, #tpu.memory_space<vmem>>, vector<2x16x128xf32>
    tpu.vector_store %arg7[%c0_41, %c32_42, %c0_43], %18#1 {strides = array<i32>} : memref<2x48x128xf32, #tpu.memory_space<vmem>>, vector<2x16x128xf32>,
    %c0_i32_44 = arith.constant 0 : i32
    %21 = arith.cmpi eq, %arg2, %c0_i32_44 : i32
    %22 = arith.extui %21 : i1 to i32
    %c0_i32_45 = arith.constant 0 : i32
    %23 = arith.cmpi ne, %22, %c0_i32_45 : i32
    scf.if %23 {
      %c0_46 = arith.constant 0 : index
      %c0_47 = arith.constant 0 : index
      %c0_48 = arith.constant 0 : index
      %24 = vector.load %arg6[%c0_46, %c0_47, %c0_48] : memref<2x48x128xf32, #tpu.memory_space<vmem>>, vector<2x48x128xf32>
      %cst = arith.constant dense<0.000000e+00> : vector<2x48xf32>
      %25 = vector.multi_reduction <add>, %24, %cst [2] : vector<2x48x128xf32> to vector<2x48xf32>
      %c0_49 = arith.constant 0 : index
      %c0_50 = arith.constant 0 : index
      %c0_51 = arith.constant 0 : index
      %26 = vector.load %arg4[%c0_49, %c0_50, %c0_51] : memref<1x2x48xf32, #tpu.memory_space<vmem>>, vector<1x2x48xf32>
      %27 = vector.shape_cast %26 : vector<1x2x48xf32> to vector<2x48xf32>
      %28 = vector.shape_cast %25 : vector<2x48xf32> to vector<1x2x48xf32>
      tpu.vector_store %arg4[%c0_49, %c0_50, %c0_51], %28 {strides = array<i32>} : memref<1x2x48xf32, #tpu.memory_space<vmem>>, vector<1x2x48xf32>,
      %c0_52 = arith.constant 0 : index
      %c0_53 = arith.constant 0 : index
      %c0_54 = arith.constant 0 : index
      %29 = vector.load %arg7[%c0_52, %c0_53, %c0_54] : memref<2x48x128xf32, #tpu.memory_space<vmem>>, vector<2x48x128xf32>
      %cst_55 = arith.constant dense<0xFF800000> : vector<2x48xf32>
      %30 = vector.multi_reduction <maximumf>, %29, %cst_55 [2] : vector<2x48x128xf32> to vector<2x48xf32>
      %c0_56 = arith.constant 0 : index
      %c0_57 = arith.constant 0 : index
      %c0_58 = arith.constant 0 : index
      %31 = vector.load %arg5[%c0_56, %c0_57, %c0_58] : memref<1x2x48xf32, #tpu.memory_space<vmem>>, vector<1x2x48xf32>
      %32 = vector.shape_cast %31 : vector<1x2x48xf32> to vector<2x48xf32>
      %33 = vector.shape_cast %30 : vector<2x48xf32> to vector<1x2x48xf32>
      tpu.vector_store %arg5[%c0_56, %c0_57, %c0_58], %33 {strides = array<i32>} : memref<1x2x48xf32, #tpu.memory_space<vmem>>, vector<1x2x48xf32>,
    } else {
    }
    return
  }
  func.func @transform_0(%arg0: i32, %arg1: i32, %arg2: i32) -> (i32, i32, i32) {
    %c1_i32 = arith.constant 1 : i32
    %0 = arith.muli %arg1, %c1_i32 : i32
    %1 = arith.addi %0, %arg2 : i32
    %c0_i32 = arith.constant 0 : i32
    %c0_i32_0 = arith.constant 0 : i32
    return %arg0, %c0_i32, %1 : i32, i32, i32
  }
  func.func @transform_1(%arg0: i32, %arg1: i32, %arg2: i32) -> (i32, i32, i32) {
    %c0_i32 = arith.constant 0 : i32
    %c0_i32_0 = arith.constant 0 : i32
    return %arg1, %arg0, %c0_i32 : i32, i32, i32
  }
  func.func @transform_2(%arg0: i32, %arg1: i32, %arg2: i32) -> (i32, i32, i32) {
    %c0_i32 = arith.constant 0 : i32
    %c0_i32_0 = arith.constant 0 : i32
    return %arg1, %arg0, %c0_i32 : i32, i32, i32
  }
}

</mosaic_0001>

<bundles_post_ra>
// kernel: tpu_custom_call.1
= control target key start
LH: loop header
LB: loop body
LE: loop exit
PB: predicated region body
PF: predicated region fallthrough
CT: control target
= control target key end

     0   :  { %8 = vsyncpa [#allocation5], 0  ;;  %s1086_s0 = inlined_call_operand.hbm [shape: f32[2,48,256], index: 0, kind: input, shape index: {}]   ;;  %s1087_s1 = inlined_call_operand.hbm [shape: f32[1,2,48], index: 1, kind: output, shape index: {0}]   ;;  %s1088_s2 = inlined_call_operand.hbm [shape: f32[1,2,48], index: 2, kind: output, shape index: {1}]  }
   0x1   :  { %9 = vsyncpa [#allocation6], 0 }
   0x2   :  { %10 = vsyncpa [#allocation9], 0  ;;  %s19_s11 = sshll.u32 %s1086_s0, 4  ;;  %s1015_s12 = smov [#allocation4]   ;;  %s20_s11 = int_to_ptr.hbm [resolvable:$true] %s19_s11 }
   0x3   :  { %s21_s13 = sshll.u32 %s1015_s12, 4  ;;  %s1016_s14 = smov 256   ;;  %s22_s13 = int_to_ptr.vmem [resolvable:$true] %s21_s13 }
   0x4   :  { %s1017_s15 = smov 16  }
   0x5   :  { %27 = dma.hbm_to_vmem [thread:$0]  %s20_s11, 3072, %s22_s13, [#allocation5], %s1016_s14, %s1016_s14, %s1017_s15  }
   0x6   :  { %901 = dma.done.wait [#allocation5], 3072  }
   0x7   :  { %902 = vsyncadd [#allocation5], 4294964224  ;;  %v1018_v0 = vmov 0.0   ;;  %v1019_v1 = vmov -inf   ;;  %v907_v2 = vmov -inf   ;;  %v911_v3 = vmov -inf  }
   0x8   :  { %38 = vst [vmem:[#allocation2 + $0x30] sm:$0xff] %v1018_v0  ;;  %v915_v4 = vmov -inf   ;;  %v919_v5 = vmov -inf   ;;  %v923_v6 = vmov 0.0   ;;  %v927_v7 = vmov 0.0   ;;  %s1040_s0 = smov 0  }
   0x9   :  { %39 = vst [vmem:[#allocation2] sm:$0xff] %v1018_v0  ;;  %v931_v8 = vmov 0.0   ;;  %v935_v9 = vmov 0.0  }
   0xa   :  { %40 = vst [vmem:[#allocation2 + $0x58] sm:$0xff] %v1018_v0 }
   0xb   :  { %41 = vst [vmem:[#allocation2 + $0x18] sm:$0xff] %v1018_v0 }
   0xc   :  { %42 = vst [vmem:[#allocation2 + $0x50] sm:$0xff] %v1018_v0 }
   0xd   :  { %43 = vst [vmem:[#allocation2 + $0x20] sm:$0xff] %v1018_v0 }
   0xe   :  { %44 = vst [vmem:[#allocation2 + $0x8] sm:$0xff] %v1018_v0 }
   0xf   :  { %45 = vst [vmem:[#allocation2 + $0x38] sm:$0xff] %v1018_v0 }
  0x10   :  { %46 = vst [vmem:[#allocation2 + $0x28] sm:$0xff] %v1018_v0 }
  0x11   :  { %47 = vst [vmem:[#allocation2 + $0x48] sm:$0xff] %v1018_v0 }
  0x12   :  { %48 = vst [vmem:[#allocation2 + $0x10] sm:$0xff] %v1018_v0 }
  0x13   :  { %49 = vst [vmem:[#allocation2 + $0x40] sm:$0xff] %v1018_v0 }
  0x14   :  { %50 = vst [vmem:[#allocation3 + $0x48] sm:$0xff] %v1019_v1 }
  0x15   :  { %51 = vst [vmem:[#allocation3] sm:$0xff] %v1019_v1 }
  0x16   :  { %52 = vst [vmem:[#allocation3 + $0x50] sm:$0xff] %v1019_v1 }
  0x17   :  { %53 = vst [vmem:[#allocation3 + $0x30] sm:$0xff] %v1019_v1 }
  0x18   :  { %54 = vst [vmem:[#allocation3 + $0x8] sm:$0xff] %v1019_v1 }
  0x19   :  { %55 = vst [vmem:[#allocation3 + $0x20] sm:$0xff] %v1019_v1 }
  0x1a   :  { %56 = vst [vmem:[#allocation3 + $0x18] sm:$0xff] %v1019_v1 }
  0x1b   :  { %57 = vst [vmem:[#allocation3 + $0x40] sm:$0xff] %v1019_v1 }
  0x1c   :  { %58 = vst [vmem:[#allocation3 + $0x38] sm:$0xff] %v1019_v1 }
  0x1d   :  { %59 = vst [vmem:[#allocation3 + $0x28] sm:$0xff] %v1019_v1 }
  0x1e   :  { %60 = vst [vmem:[#allocation3 + $0x58] sm:$0xff] %v1019_v1 }
  0x1f   :  { %61 = vst [vmem:[#allocation3 + $0x10] sm:$0xff] %v1019_v1 }
  0x20 LB: > { %s492_s16 = sshll.u32 %s941_s0, 7  ;;  %s75_s0 = sadd.s32 1, %s941_s0   ;;  %s941_s0 = sphi %s1040_s0, %s75_s0   ;;  %v937_v9 = vphi %v935_v9, %v936_v9   ;;  %v933_v8 = vphi %v931_v8, %v932_v8   ;;  %v929_v7 = vphi %v927_v7, %v928_v7   ;;  %v925_v6 = vphi %v923_v6, %v924_v6   ;;  %v921_v5 = vphi %v919_v5, %v920_v5   ;;  %v917_v4 = vphi %v915_v4, %v916_v4   ;;  %v913_v3 = vphi %v911_v3, %v912_v3   ;;  %v909_v2 = vphi %v907_v2, %v908_v2  }
  0x21   : > { %s85_s17 = sshra.s32 %s492_s16, 7  ;;  %p72_p0 = scmp.ge.s32.totalorder %s75_s0, 2  }
  0x22   : > { %s493_s18 = sshll.u32 %s85_s17, 3  ;;  %v109_v22 = vld [vmem:[#allocation2 + $0x58] sm:$0xff] (%p72_p0)   ;;  %v111_v24 = vld [vmem:[#allocation2 + $0x28] sm:$0xff] (%p72_p0)   ;;  %v113_v26 = vld [vmem:[#allocation3 + $0x50] sm:$0xff] (%p72_p0)   ;;  %s1045_s20 = smov (%p72_p0), 0  }
  0x23   : > { %s88_s19 = scalar_lea.vmem [#allocation4], %s493_s18  ;;  %v110_v23 = vld [vmem:[#allocation2 + $0x18] sm:$0xff] (%p72_p0)   ;;  %v112_v25 = vld [vmem:[#allocation2 + $0x48] sm:$0xff] (%p72_p0)   ;;  %v114_v27 = vld [vmem:[#allocation3 + $0x30] sm:$0xff] (%p72_p0)   ;;  %v955_v33 = vmov (%p72_p0), %v113_v26   ;;  %v963_v35 = vmov (%p72_p0), %v111_v24   ;;  %v971_v37 = vmov (%p72_p0), %v109_v22  }
  0x24   : > { %v89_v10 = vld [vmem:[%s88_s19] sm:$0xff]  ;;  %v90_v11 = vld [vmem:[%s88_s19 + $0x10] sm:$0xff]  ;;  %74 = sbr.rel (!%p72_p0) target bundleno = 32 (0x20), region = 69  ;;  %v115_v28 = vld [vmem:[#allocation3 + $0x38] sm:$0xff] (%p72_p0)   ;;  %v951_v32 = vmov (%p72_p0), %v114_v27   ;;  %v959_v34 = vmov (%p72_p0), %v112_v25   ;;  %v967_v36 = vmov (%p72_p0), %v110_v23  }
  0x25   : > { %v91_v12 = vld [vmem:[%s88_s19 + $0x60] sm:$0xff]  ;;  %v92_v13 = vld [vmem:[%s88_s19 + $0x70] sm:$0xff]  ;;  %v93_v14 = vadd.f32 %v937_v9, %v89_v10   ;;  %v94_v15 = vadd.f32 %v933_v8, %v90_v11   ;;  %v97_v17 = vmax.f32 %v921_v5, %v89_v10   ;;  %v98_v19 = vmax.f32 %v917_v4, %v90_v11   ;;  %v116_v29 = vld [vmem:[#allocation3 + $0x28] sm:$0xff] (%p72_p0)  }
  0x26   : > { %v95_v16 = vadd.f32 %v929_v7, %v91_v12   ;;  %v96_v18 = vadd.f32 %v925_v6, %v92_v13   ;;  %v99_v20 = vmax.f32 %v913_v3, %v91_v12   ;;  %v100_v21 = vmax.f32 %v909_v2, %v92_v13  }
  0x27   : > { %v916_v4 = vmov %v98_v19   ;;  %v920_v5 = vmov %v97_v17   ;;  %v932_v8 = vmov %v94_v15   ;;  %v936_v9 = vmov %v93_v14   ;;  %101 = vst [vmem:[#allocation2 + $0x30] sm:$0xff] (%p72_p0), %v93_v14 }
  0x28   : > { %v908_v2 = vmov %v100_v21   ;;  %v912_v3 = vmov %v99_v20   ;;  %v924_v6 = vmov %v96_v18   ;;  %v928_v7 = vmov %v95_v16   ;;  %102 = vst [vmem:[#allocation2] sm:$0xff] (%p72_p0), %v94_v15 }
  0x29   :  { %103 = vst [vmem:[#allocation2 + $0x8] sm:$0xff] %v95_v16  ;;  %v943_v30 = vmov %v116_v29   ;;  %v947_v31 = vmov %v115_v28  }
  0x2a   :  { %104 = vst [vmem:[#allocation2 + $0x38] sm:$0xff] %v96_v18 }
  0x2b   :  { %105 = vst [vmem:[#allocation3 + $0x48] sm:$0xff] %v97_v17 }
  0x2c   :  { %106 = vst [vmem:[#allocation3] sm:$0xff] %v98_v19 }
  0x2d   :  { %107 = vst [vmem:[#allocation3 + $0x18] sm:$0xff] %v99_v20 }
  0x2e   :  { %108 = vst [vmem:[#allocation3 + $0x40] sm:$0xff] %v100_v21 }
  0x2f LB: > { %s494_s21 = sshll.u32 %s977_s20, 7  ;;  %s122_s20 = sadd.s32 1, %s977_s20   ;;  %s977_s20 = sphi %s1045_s20, %s122_s20   ;;  %v973_v37 = vphi %v971_v37, %v972_v37   ;;  %v969_v36 = vphi %v967_v36, %v968_v36   ;;  %v965_v35 = vphi %v963_v35, %v964_v35   ;;  %v961_v34 = vphi %v959_v34, %v960_v34   ;;  %v957_v33 = vphi %v955_v33, %v956_v33   ;;  %v953_v32 = vphi %v951_v32, %v952_v32   ;;  %v949_v31 = vphi %v947_v31, %v948_v31   ;;  %v945_v30 = vphi %v943_v30, %v944_v30  }
  0x30   : > { %s132_s22 = sshra.s32 %s494_s21, 7  ;;  %p119_p1 = scmp.ge.s32.totalorder %s122_s20, 2  }
  0x31   : > { %s495_s23 = sshll.u32 %s132_s22, 3  ;;  %v156_v50 = vld [vmem:[#allocation2 + $0x50] sm:$0xff] (%p119_p1)   ;;  %v157_v51 = vld [vmem:[#allocation2 + $0x20] sm:$0xff] (%p119_p1)   ;;  %v160_v54 = vld [vmem:[#allocation3 + $0x8] sm:$0xff] (%p119_p1)   ;;  %s1050_s25 = smov (%p119_p1), 0  }
  0x32   : > { %s135_s24 = scalar_lea.vmem [#allocation4], %s495_s23  ;;  %v158_v52 = vld [vmem:[#allocation2 + $0x10] sm:$0xff] (%p119_p1)   ;;  %v159_v53 = vld [vmem:[#allocation2 + $0x40] sm:$0xff] (%p119_p1)   ;;  %v162_v56 = vld [vmem:[#allocation3 + $0x58] sm:$0xff] (%p119_p1)   ;;  %v991_v61 = vmov (%p119_p1), %v160_v54   ;;  %v1003_v0 = vmov (%p119_p1), %v157_v51   ;;  %v1007_v1 = vmov (%p119_p1), %v156_v50  }
  0x33   : > { %v136_v38 = vld [vmem:[%s135_s24 + $0x20] sm:$0xff]  ;;  %v137_v39 = vld [vmem:[%s135_s24 + $0x30] sm:$0xff]  ;;  %121 = sbr.rel (!%p119_p1) target bundleno = 47 (0x2f), region = 80  ;;  %v983_v59 = vmov (%p119_p1), %v162_v56   ;;  %v995_v62 = vmov (%p119_p1), %v159_v53   ;;  %v999_v63 = vmov (%p119_p1), %v158_v52  }
  0x34   : > { %v138_v40 = vld [vmem:[%s135_s24 + $0x80] sm:$0xff]  ;;  %v139_v41 = vld [vmem:[%s135_s24 + $0x90] sm:$0xff]  ;;  %v140_v42 = vadd.f32 %v973_v37, %v136_v38   ;;  %v141_v43 = vadd.f32 %v969_v36, %v137_v39   ;;  %v144_v45 = vmax.f32 %v957_v33, %v136_v38   ;;  %v145_v47 = vmax.f32 %v953_v32, %v137_v39  }
  0x35   : > { %v142_v44 = vadd.f32 %v965_v35, %v138_v40   ;;  %v143_v46 = vadd.f32 %v961_v34, %v139_v41   ;;  %v146_v48 = vmax.f32 %v949_v31, %v138_v40   ;;  %v147_v49 = vmax.f32 %v945_v30, %v139_v41   ;;  %v161_v55 = vld [vmem:[#allocation3 + $0x20] sm:$0xff] (%p119_p1)   ;;  %v163_v57 = vld [vmem:[#allocation3 + $0x10] sm:$0xff] (%p119_p1)  }
  0x36   : > { %v952_v32 = vmov %v145_v47   ;;  %v956_v33 = vmov %v144_v45   ;;  %v968_v36 = vmov %v141_v43   ;;  %v972_v37 = vmov %v140_v42   ;;  %148 = vst [vmem:[#allocation2 + $0x58] sm:$0xff] (%p119_p1), %v140_v42 }
  0x37   : > { %v944_v30 = vmov %v147_v49   ;;  %v948_v31 = vmov %v146_v48   ;;  %v960_v34 = vmov %v143_v46   ;;  %v964_v35 = vmov %v142_v44   ;;  %149 = vst [vmem:[#allocation2 + $0x18] sm:$0xff] (%p119_p1), %v141_v43 }
  0x38   :  { %150 = vst [vmem:[#allocation2 + $0x28] sm:$0xff] %v142_v44  ;;  %v979_v58 = vmov %v163_v57   ;;  %v987_v60 = vmov %v161_v55  }
  0x39   :  { %151 = vst [vmem:[#allocation2 + $0x48] sm:$0xff] %v143_v46 }
  0x3a   :  { %152 = vst [vmem:[#allocation3 + $0x50] sm:$0xff] %v144_v45 }
  0x3b   :  { %153 = vst [vmem:[#allocation3 + $0x30] sm:$0xff] %v145_v47 }
  0x3c   :  { %154 = vst [vmem:[#allocation3 + $0x38] sm:$0xff] %v146_v48 }
  0x3d   :  { %155 = vst [vmem:[#allocation3 + $0x28] sm:$0xff] %v147_v49 }
  0x3e LB: > { %s496_s26 = sshll.u32 %s1013_s25, 7  ;;  %s169_s25 = sadd.s32 1, %s1013_s25   ;;  %s1013_s25 = sphi %s1050_s25, %s169_s25   ;;  %v1009_v1 = vphi %v1007_v1, %v1008_v1   ;;  %v1005_v0 = vphi %v1003_v0, %v1004_v0   ;;  %v1001_v63 = vphi %v999_v63, %v1000_v63   ;;  %v997_v62 = vphi %v995_v62, %v996_v62   ;;  %v993_v61 = vphi %v991_v61, %v992_v61   ;;  %v989_v60 = vphi %v987_v60, %v988_v60   ;;  %v985_v59 = vphi %v983_v59, %v984_v59   ;;  %v981_v58 = vphi %v979_v58, %v980_v58  }
  0x3f   : > { %s179_s27 = sshra.s32 %s496_s26, 7  ;;  %p166_p2 = scmp.ge.s32.totalorder %s169_s25, 2  }
  0x40   : > { %s497_s28 = sshll.u32 %s179_s27, 3  ;;  %v208_v14 = vld [vmem:[#allocation2 + $0x58] sm:$0xff] (%p166_p2)  ;;  %v206_v15 = vld [vmem:[#allocation2 + $0x30] sm:$0xff] (%p166_p2)  ;;  %v207_v17 = vld [vmem:[#allocation2] sm:$0xff] (%p166_p2)  ;;  %v254_v42 = vlaneseq (%p166_p2)  ;;  %vm259_vm0 = vcmask (%p166_p2), 130112   ;;  %vm263_vm1 = vcmask (%p166_p2), 195712  }
  0x41   : > { %s182_s29 = scalar_lea.vmem [#allocation4], %s497_s28  ;;  %222 = vadd.xlane.f32.xlu1 (%p166_p2), %v208_v14  ;;  %218 = vadd.xlane.f32.xlu0 (%p166_p2), %v206_v15  ;;  %v209_v16 = vld [vmem:[#allocation2 + $0x18] sm:$0xff] (%p166_p2)  ;;  %v293_v18 = vld [vmem:[#allocation3 + $0x48] sm:$0xff] (%p166_p2)  ;;  %v300_v21 = vld [vmem:[#allocation3 + $0x40] sm:$0xff] (%p166_p2)  ;;  %vm267_vm2 = vcmask (%p166_p2), 261312   ;;  %vm271_vm3 = vcmask (%p166_p2), 326912  }
  0x42   : > { %v183_v2 = vld [vmem:[%s182_s29 + $0x40] sm:$0xff]  ;;  %v184_v3 = vld [vmem:[%s182_s29 + $0x50] sm:$0xff]  ;;  %168 = sbr.rel (!%p166_p2) target bundleno = 62 (0x3e), region = 91  ;;  %v213_v19 = vld [vmem:[#allocation2 + $0x38] sm:$0xff] (%p166_p2)  ;;  %v255_v46 = vand.u32 (%p166_p2), 127, %v254_v42  ;;  %vm275_vm4 = vcmask (%p166_p2), 392512  }
  0x43   : > { %v185_v4 = vld [vmem:[%s182_s29 + $0xa0] sm:$0xff]  ;;  %v186_v5 = vld [vmem:[%s182_s29 + $0xb0] sm:$0xff]  ;;  %v187_v6 = vadd.f32 %v1009_v1, %v183_v2   ;;  %v188_v7 = vadd.f32 %v1005_v0, %v184_v3   ;;  %v191_v9 = vmax.f32 %v993_v61, %v183_v2   ;;  %v192_v11 = vmax.f32 %v989_v60, %v184_v3   ;;  %v212_v20 = vld [vmem:[#allocation2 + $0x8] sm:$0xff] (%p166_p2)  ;;  %s1020_s30 = smov (%p166_p2), [#allocation7]   ;;  %s373_s6 = sshll.u32 (%p166_p2), %s1087_s1, 4  ;;  %s374_s6 = int_to_ptr.hbm [resolvable:$true] %s373_s6 }
  0x44   : > { %v189_v8 = vadd.f32 %v1001_v63, %v185_v4   ;;  %v190_v10 = vadd.f32 %v997_v62, %v186_v5   ;;  %v193_v12 = vmax.f32 %v985_v59, %v185_v4   ;;  %v194_v13 = vmax.f32 %v981_v58, %v186_v5   ;;  %v299_v22 = vld [vmem:[#allocation3 + $0x18] sm:$0xff] (%p166_p2)  ;;  %v294_v23 = vld [vmem:[#allocation3] sm:$0xff] (%p166_p2)  ;;  %v295_v25 = vld [vmem:[#allocation3 + $0x50] sm:$0xff] (%p166_p2)  ;;  %s371_s3 = sshll.u32 (%p166_p2), %s1020_s30, 4  ;;  %s1021_s7 = smov (%p166_p2), [#allocation8]   ;;  %s372_s3 = int_to_ptr.vmem [resolvable:$true] %s371_s3 }
  0x45   : > { %v988_v60 = vmov %v192_v11   ;;  %v992_v61 = vmov %v191_v9   ;;  %v1004_v0 = vmov %v188_v7   ;;  %v1008_v1 = vmov %v187_v6   ;;  %195 = vst [vmem:[#allocation2 + $0x50] sm:$0xff] (%p166_p2), %v187_v6  ;;  %226 = vadd.xlane.f32.xlu2 (%p166_p2), %v187_v6  ;;  %v301_v24 = vld [vmem:[#allocation3 + $0x38] sm:$0xff] (%p166_p2)  ;;  %v214_v26 = vld [vmem:[#allocation2 + $0x28] sm:$0xff] (%p166_p2)  ;;  %v296_v28 = vld [vmem:[#allocation3 + $0x30] sm:$0xff] (%p166_p2)  ;;  %s382_s8 = sshll.u32 (%p166_p2), %s1021_s7, 4  ;;  %s384_s11 = sshll.u32 (%p166_p2), %s1088_s2, 4  ;;  %s383_s8 = int_to_ptr.vmem [resolvable:$true] %s382_s8  ;;  %s385_s11 = int_to_ptr.hbm [resolvable:$true] %s384_s11 }
  0x46   : > { %v980_v58 = vmov %v194_v13   ;;  %v984_v59 = vmov %v193_v12   ;;  %v996_v62 = vmov %v190_v10   ;;  %v1000_v63 = vmov %v189_v8   ;;  %196 = vst [vmem:[#allocation2 + $0x20] sm:$0xff] (%p166_p2), %v188_v7  ;;  %v302_v27 = vld [vmem:[#allocation3 + $0x28] sm:$0xff] (%p166_p2) }
  0x47   :  { %199 = vst [vmem:[#allocation3 + $0x8] sm:$0xff] %v191_v9  ;;  %v215_v29 = vld [vmem:[#allocation2 + $0x48] sm:$0xff]  ;;  %v257_v47 = vadd.s32 4294967288, %v255_v46  ;;  %v261_v52 = vadd.s32 4294967280, %v255_v46  ;;  %v265_v54 = vadd.s32 4294967272, %v255_v46  ;;  %v269_v57 = vadd.s32 4294967264, %v255_v46 }
  0x48   :  { %197 = vst [vmem:[#allocation2 + $0x10] sm:$0xff] %v189_v8  ;;  %v273_v0 = vadd.s32 4294967256, %v255_v46  ;;  %vm288_vm5 = vcmask 1041409   ;;  %vm291_vm6 = vcmask 386048  }
  0x49   :  { %201 = vst [vmem:[#allocation3 + $0x58] sm:$0xff] %v193_v12  ;;  %224 = vadd.xlane.f32.xlu1 %v209_v16  ;;  %220 = vadd.xlane.f32.xlu0 %v207_v17 }
  0x4a   :  { %200 = vst [vmem:[#allocation3 + $0x20] sm:$0xff] %v192_v11 }
  0x4b   :  { %198 = vst [vmem:[#allocation2 + $0x40] sm:$0xff] %v190_v10 }
  0x4c   :  { %202 = vst [vmem:[#allocation3 + $0x10] sm:$0xff] %v194_v13 }
  0x4d   :  { %228 = vadd.xlane.f32.xlu2 %v188_v7 }
  0x51   :  { %232 = vadd.xlane.f32.xlu1 %v213_v19  ;;  %230 = vadd.xlane.f32.xlu0 %v212_v20 }
  0x55   :  { %305 = vmax.xlane.f32.xlu2 %v293_v18 }
  0x59   :  { %317 = vmax.xlane.f32.xlu1 %v299_v22  ;;  %307 = vmax.xlane.f32.xlu0 %v294_v23 }
  0x5d   :  { %319 = vmax.xlane.f32.xlu2 %v300_v21 }
  0x61   :  { %309 = vmax.xlane.f32.xlu1 %v295_v25  ;;  %234 = vadd.xlane.f32.xlu0 %v214_v26 }
  0x65   :  { %321 = vmax.xlane.f32.xlu2 %v301_v24 }
  0x69   :  { %311 = vmax.xlane.f32.xlu1 %v296_v28  ;;  %236 = vadd.xlane.f32.xlu0 %v215_v29 }
  0x6d   :  { %323 = vmax.xlane.f32.xlu2 %v302_v27 }
  0x71   :  { %313 = vmax.xlane.f32.xlu1 %v191_v9  ;;  %238 = vadd.xlane.f32.xlu0 %v189_v8 }
  0x75   :  { %325 = vmax.xlane.f32.xlu2 %v193_v12 }
  0x79   :  { %315 = vmax.xlane.f32.xlu1 %v192_v11  ;;  %240 = vadd.xlane.f32.xlu0 %v190_v10 }
  0x7d   :  { %327 = vmax.xlane.f32.xlu2 %v194_v13 }
  0xb4   :  { %v223_v31 = vpop.xlane.xlu1 %222  ;;  %v219_v32 = vpop.xlane.xlu0 %218 }
  0xb5   :  { %v256_v53 = vperm.slane %v219_v32, %v255_v46  ;;  %v262_v56 = vperm.slane %v223_v31, %v261_v52 }
  0xb8   :  { %v227_v30 = vpop.xlane.xlu2 %226 }
  0xb9   :  { %v270_v63 = vperm.slane %v227_v30, %v269_v57 }
  0xbc   :  { %v225_v34 = vpop.xlane.xlu1 %224  ;;  %v221_v35 = vpop.xlane.xlu0 %220 }
  0xbd   :  { %v258_v49 = vperm.slane %v221_v35, %v257_v47  ;;  %v266_v60 = vperm.slane %v225_v34, %v265_v54 }
  0xbf   :  { %v260_v55 = vsel %vm259_vm0, %v258_v49, %v256_v53 }
  0xc0   :  { %v1055_v33 = vpop.xlane.xlu2 %228  ;;  %v264_v58 = vsel %vm263_vm1, %v262_v56, %v260_v55 }
  0xc1   :  { %v268_v4 = vsel %vm267_vm2, %v266_v60, %v264_v58  ;;  %v274_v13 = vperm.slane %v1055_v33, %v273_v0 }
  0xc2   :  { %v272_v16 = vsel %vm271_vm3, %v270_v63, %v268_v4 }
  0xc4   :  { %v233_v37 = vpop.xlane.xlu1 %232  ;;  %v231_v38 = vpop.xlane.xlu0 %230 }
  0xc5   :  { %v278_v5 = vperm.slane %v233_v37, %v257_v47  ;;  %v277_v6 = vperm.slane %v231_v38, %v255_v46  ;;  %v276_v38 = vsel %vm275_vm4, %v274_v13, %v272_v16 }
  0xc7   :  { %v279_v21 = vsel %vm259_vm0, %v278_v5, %v277_v6 }
  0xc8   :  { %v306_v36 = vpop.xlane.xlu2 %305 }
  0xc9   :  { %v341_v9 = vperm.slane %v306_v36, %v255_v46 }
  0xcc   :  { %v318_v40 = vpop.xlane.xlu1 %317  ;;  %v308_v41 = vpop.xlane.xlu0 %307 }
  0xcd   :  { %v352_v1 = vperm.slane %v318_v40, %v255_v46  ;;  %v342_v2 = vperm.slane %v308_v41, %v257_v47 }
  0xcf   :  { %v343_v17 = vsel %vm259_vm0, %v342_v2, %v341_v9 }
  0xd0   :  { %v320_v39 = vpop.xlane.xlu2 %319 }
  0xd1   :  { %v353_v3 = vperm.slane %v320_v39, %v257_v47 }
  0xd3   :  { %v354_v18 = vsel %vm259_vm0, %v353_v3, %v352_v1 }
  0xd4   :  { %v310_v44 = vpop.xlane.xlu1 %309  ;;  %v235_v45 = vpop.xlane.xlu0 %234 }
  0xd5   :  { %v344_v7 = vperm.slane %v310_v44, %v261_v52  ;;  %v280_v10 = vperm.slane %v235_v45, %v261_v52 }
  0xd7   :  { %v345_v22 = vsel %vm263_vm1, %v344_v7, %v343_v17  ;;  %v281_v25 = vsel %vm263_vm1, %v280_v10, %v279_v21 }
  0xd8   :  { %v322_v43 = vpop.xlane.xlu2 %321 }
  0xd9   :  { %v355_v8 = vperm.slane %v322_v43, %v261_v52 }
  0xdb   :  { %v356_v23 = vsel %vm263_vm1, %v355_v8, %v354_v18 }
  0xdc   :  { %v312_v50 = vpop.xlane.xlu1 %311  ;;  %v237_v51 = vpop.xlane.xlu0 %236 }
  0xdd   :  { %v346_v11 = vperm.slane %v312_v50, %v265_v54  ;;  %v282_v14 = vperm.slane %v237_v51, %v265_v54 }
  0xdf   :  { %v347_v26 = vsel %vm267_vm2, %v346_v11, %v345_v22  ;;  %v283_v31 = vsel %vm267_vm2, %v282_v14, %v281_v25 }
  0xe0   :  { %v324_v48 = vpop.xlane.xlu2 %323 }
  0xe1   :  { %v357_v12 = vperm.slane %v324_v48, %v265_v54 }
  0xe3   :  { %v358_v27 = vsel %vm267_vm2, %v357_v12, %v356_v23 }
  0xe4   :  { %v314_v61 = vpop.xlane.xlu1 %313  ;;  %v239_v62 = vpop.xlane.xlu0 %238 }
  0xe5   :  { %v348_v19 = vperm.slane %v314_v61, %v269_v57  ;;  %v284_v20 = vperm.slane %v239_v62, %v269_v57 }
  0xe7   :  { %v349_v35 = vsel %vm271_vm3, %v348_v19, %v347_v26  ;;  %v285_v36 = vsel %vm271_vm3, %v284_v20, %v283_v31 }
  0xe8   :  { %v326_v59 = vpop.xlane.xlu2 %325 }
  0xe9   :  { %v359_v15 = vperm.slane %v326_v59, %v269_v57 }
  0xeb   :  { %v360_v32 = vsel %vm271_vm3, %v359_v15, %v358_v27 }
  0xec   :  { %v316_v28 = vpop.xlane.xlu1 %315  ;;  %v241_v29 = vpop.xlane.xlu0 %240 }
  0xed   :  { %v350_v33 = vperm.slane %v316_v28, %v273_v0  ;;  %v286_v34 = vperm.slane %v241_v29, %v273_v0 }
  0xef   :  { %v287_v39 = vsel %vm275_vm4, %v286_v34, %v285_v36  ;;  %v351_v40 = vsel %vm275_vm4, %v350_v33, %v349_v35 }
  0xf0   :  { %v328_v24 = vpop.xlane.xlu2 %327  ;;  %v289_v41 = vsel %vm288_vm5, %v287_v39, %v276_v38 }
  0xf1   :  { %v361_v30 = vperm.slane %v328_v24, %v273_v0  ;;  %292 = vst.msk [vmem:[#allocation7] sm:$0x3] %vm291_vm6, %v289_v41 }
  0xf2   :  { %376 = dma.vmem_to_hbm [thread:$0]  %s372_s3, 32, %s374_s6, [#allocation6]  }
  0xf3   :  { %v362_v37 = vsel %vm275_vm4, %v361_v30, %v360_v32 }
  0xf4   :  { %v363_v42 = vsel %vm288_vm5, %v362_v37, %v351_v40 }
  0xf5   :  { %365 = vst.msk [vmem:[#allocation8] sm:$0x3] %vm291_vm6, %v363_v42 }
  0xf6   :  { %387 = dma.vmem_to_hbm [thread:$0]  %s383_s8, 32, %s385_s11, [#allocation9]  }
  0xf7   :  { %903 = dma.done.wait [#allocation6], 32  }
  0xf8   :  { %904 = vsyncadd [#allocation6], 4294967264 }
  0xf9   :  { %905 = dma.done.wait [#allocation9], 32  }
  0xfa   :  { %906 = vsyncadd [#allocation9], 4294967264 }
  0xfb   :  { %396 = vsyncpa [#allocation5], 1 }
  0xfc   :  { %397 = vsyncpa [#allocation6], 1 }
  0xfd   :  { %398 = vsyncpa [#allocation9], 1 }

</bundles_post_ra>
